<compile_context>
chip_gen: v7x
topology: tpu7x:2x2x1
jax: 0.10.0
libtpu: 0.0.40
codegen_flags: <defaults>
</compile_context>

<pallas_src>
import math
import functools

import jax
import jax.numpy as jnp
from jax.experimental import pallas as pl
from jax.experimental.pallas import tpu as pltpu

# ---------------------------------------------------------------------------
# ATSSPostProcessor config (the module's __init__ args) — deterministic consts.
# ---------------------------------------------------------------------------
PRE_NMS_THRESH = 0.05
PRE_NMS_TOP_N = 1000
NMS_THRESH = 0.6
FPN_POST_NMS_TOP_N = 100
MIN_SIZE = 0.0
NUM_CLASSES = 4
BOX_CODER_WEIGHTS = (10.0, 10.0, 5.0, 5.0)      # standard ATSS BoxCoder
BBOX_XFORM_CLIP = math.log(1000.0 / 16.0)

# Lane padding value for classification logits: sigmoid(-30) ~ 9e-14, so padded
# lanes can never become candidates and their scores are ~0.
_PAD_LOGIT = -30.0


# ---------------------------------------------------------------------------
# Pallas kernel: one grid step == one (L-tile, image) pair over the whole FPN.
# ---------------------------------------------------------------------------
def _atss_fused_kernel(img_size_ref,                  # SMEM prefetch (N, 2) i32 (h, w)
                       cls_ref, reg_ref, anc_ref,     # VMEM inputs
                       scores_ref, boxes_ref, keep_ref, count_ref):
    b = pl.program_id(1)                              # image index (axis 1 of grid)

    # --- classification branch: sigmoid, sqrt, candidate count ---------------
    probs = jax.nn.sigmoid(cls_ref[0])                # (C, R, 128), fully dense tiles
    scores_ref[0] = jnp.sqrt(probs)                   # torch.sqrt(per_box_cls)
    cand = (probs > PRE_NMS_THRESH).astype(jnp.int32)
    # partial candidate count for this (image, tile); clamped per level in XLA
    count_ref[...] = jnp.sum(cand).reshape(1, 1, 1, 1)

    # --- regression branch: ATSS box-coder decode -----------------------------
    # anchor-derived planes precomputed once in the wrapper (grid-invariant)
    ctr_x = anc_ref[0]                                # (R, 128)
    ctr_y = anc_ref[1]
    widths = anc_ref[2]
    heights = anc_ref[3]

    wx, wy, ww, wh = BOX_CODER_WEIGHTS
    dx = reg_ref[0, 0] / wx                           # (R, 128)
    dy = reg_ref[0, 1] / wy
    dw = jnp.minimum(reg_ref[0, 2] / ww, BBOX_XFORM_CLIP)
    dh = jnp.minimum(reg_ref[0, 3] / wh, BBOX_XFORM_CLIP)

    pred_ctr_x = dx * widths + ctr_x
    pred_ctr_y = dy * heights + ctr_y
    half_w = 0.5 * (jnp.exp(dw) * widths - 1.0)
    half_h = 0.5 * (jnp.exp(dh) * heights - 1.0)

    x1 = pred_ctr_x - half_w
    y1 = pred_ctr_y - half_h
    x2 = pred_ctr_x + half_w
    y2 = pred_ctr_y + half_h

    # --- detectron2 Boxes.clip(image_size): clamp x to [0, w], y to [0, h] ----
    img_h = img_size_ref[b, 0].astype(jnp.float32)
    img_w = img_size_ref[b, 1].astype(jnp.float32)
    x1 = jnp.clip(x1, 0.0, img_w)
    y1 = jnp.clip(y1, 0.0, img_h)
    x2 = jnp.clip(x2, 0.0, img_w)
    y2 = jnp.clip(y2, 0.0, img_h)

    # direct per-plane stores (no in-kernel concatenate / relayout)
    boxes_ref[0, 0] = x1
    boxes_ref[0, 1] = y1
    boxes_ref[0, 2] = x2
    boxes_ref[0, 3] = y2

    # --- detectron2 Boxes.nonempty(min_size) keep mask ------------------------
    keep_ref[0] = ((x2 - x1 > MIN_SIZE) & (y2 - y1 > MIN_SIZE)).astype(jnp.int32)


# ---------------------------------------------------------------------------
# Wrapper helpers
# ---------------------------------------------------------------------------
def _channel_major(box_cls, box_regression):
    """permute_and_flatten to channel-major (N, C, L) / (N, 4, L).

    For A == 1 (the ATSS default) this is a pure reshape of the NCHW layout —
    no HBM transpose round-trip."""
    N, AC, H, W = box_cls.shape
    A = box_regression.shape[1] // 4
    C = AC // A
    L = H * W * A
    if A == 1:
        cls = box_cls.reshape(N, C, L)
        reg = box_regression.reshape(N, 4, L)
    else:
        cls = box_cls.reshape(N, A, C, H, W).transpose(0, 2, 3, 4, 1).reshape(N, C, L)
        reg = box_regression.reshape(N, A, 4, H, W).transpose(0, 2, 3, 4, 1).reshape(N, 4, L)
    return cls.astype(jnp.float32), reg.astype(jnp.float32), C, L


def _level_layout(box_cls_levels, box_reg_levels, tile_lanes):
    """Static per-level layout in the padded, concatenated L axis."""
    offsets, valids, tiles = [], [], []
    off = 0
    for cls_l, reg_l in zip(box_cls_levels, box_reg_levels):
        _, AC, H, W = cls_l.shape
        A = reg_l.shape[1] // 4
        L = H * W * A
        nt = -(-L // tile_lanes)          # ceil-div: tiles for this level
        offsets.append(off)
        valids.append(L)
        tiles.append(nt)
        off += nt * tile_lanes
    return offsets, valids, tiles


# ---------------------------------------------------------------------------
# Fused wrapper: one pallas_call over all FPN levels.
# ---------------------------------------------------------------------------
def atss_postprocess(image_sizes, box_cls_levels, box_reg_levels, anchors_levels,
                     *, tile_lanes=1024):
    """Dense ATSS post-processing hot path (all levels fused).

    Returns (channel-major, L padded per level to a multiple of `tile_lanes`):
      scores (N, C, L_tot)   sqrt(sigmoid(logits));       padded lanes ~0
      boxes  (N, 4, L_tot)   decoded + clipped (x1,y1,x2,y2)
      keep   (N, L_tot) i32  Boxes.nonempty(min_size) mask (0/1); padded = 0
      counts (num_levels, N) clamp(candidate count, pre_nms_top_n) per level
    The candidate mask itself is not materialised — recompute downstream as
    scores > sqrt(pre_nms_thresh).
    """
    assert tile_lanes % (8 * 128) == 0, "tile must be a multiple of 8*128 lanes"
    R = tile_lanes // 128
    N = box_cls_levels[0].shape[0]
    _, _, tiles_per_level = _level_layout(box_cls_levels, box_reg_levels, tile_lanes)

    cls_parts, reg_parts, anc_parts = [], [], []
    C = None
    for cls_l, reg_l, anc_l in zip(box_cls_levels, box_reg_levels, anchors_levels):
        cls_cm, reg_cm, c, L = _channel_major(cls_l, reg_l)
        if C is None:
            C = c
        assert c == C, "all FPN levels must share the class count"
        L_pad = -(-L // tile_lanes) * tile_lanes
        pad = L_pad - L
        cls_parts.append(jnp.pad(cls_cm, ((0, 0), (0, 0), (0, pad)),
                                 constant_values=_PAD_LOGIT))
        reg_parts.append(jnp.pad(reg_cm, ((0, 0), (0, 0), (0, pad))))
        anc_parts.append(jnp.pad(jnp.transpose(anc_l.astype(jnp.float32), (1, 0)),
                                 ((0, 0), (0, pad))))

    cls_all = jnp.concatenate(cls_parts, axis=-1)      # (N, C, L_tot)
    reg_all = jnp.concatenate(reg_parts, axis=-1)      # (N, 4, L_tot)
    anc_all = jnp.concatenate(anc_parts, axis=-1)      # (4, L_tot) x1,y1,x2,y2
    L_tot = cls_all.shape[-1]
    n_rows = L_tot // 128
    n_tiles = L_tot // tile_lanes

    # Hoist anchor-derived quantities out of the kernel (grid-invariant; the
    # kernel would otherwise recompute them for every image).
    ax1, ay1, ax2, ay2 = anc_all[0], anc_all[1], anc_all[2], anc_all[3]
    anc_derived = jnp.stack([(ax2 + ax1) * 0.5,        # ctr_x
                             (ay2 + ay1) * 0.5,        # ctr_y
                             ax2 - ax1 + 1.0,          # widths  (TO_REMOVE = 1)
                             ay2 - ay1 + 1.0],         # heights
                            axis=0)

    # Sublane-dense views: last two dims (n_rows, 128) -> per-step (R,128) tiles.
    cls_in = cls_all.reshape(N, C, n_rows, 128)
    reg_in = reg_all.reshape(N, 4, n_rows, 128)
    anc_in = anc_derived.reshape(4, n_rows, 128)
    img_sz = image_sizes.astype(jnp.int32)

    grid_spec = pltpu.PrefetchScalarGridSpec(
        num_scalar_prefetch=1,
        # grid = (L-tiles, images); image axis innermost so the (t-indexed)
        # anchor block is not re-fetched between consecutive steps.
        grid=(n_tiles, N),
        in_specs=[
            pl.BlockSpec((1, C, R, 128), lambda t, b, isz: (b, 0, t, 0)),
            pl.BlockSpec((1, 4, R, 128), lambda t, b, isz: (b, 0, t, 0)),
            pl.BlockSpec((4, R, 128), lambda t, b, isz: (0, t, 0)),
        ],
        out_specs=[
            pl.BlockSpec((1, C, R, 128), lambda t, b, isz: (b, 0, t, 0)),   # scores
            pl.BlockSpec((1, 4, R, 128), lambda t, b, isz: (b, 0, t, 0)),   # boxes
            pl.BlockSpec((1, R, 128), lambda t, b, isz: (b, t, 0)),         # keep
            pl.BlockSpec((1, 1, 1, 1), lambda t, b, isz: (b, t, 0, 0)),     # counts
        ],
    )
    out_shapes = (
        jax.ShapeDtypeStruct((N, C, n_rows, 128), jnp.float32),
        jax.ShapeDtypeStruct((N, 4, n_rows, 128), jnp.float32),
        jax.ShapeDtypeStruct((N, n_rows, 128), jnp.int32),
        jax.ShapeDtypeStruct((N, n_tiles, 1, 1), jnp.int32),
    )

    scores4, boxes4, keep3, tile_counts = pl.pallas_call(
        _atss_fused_kernel,
        grid_spec=grid_spec,
        out_shape=out_shapes,
        compiler_params=pltpu.CompilerParams(
            dimension_semantics=("parallel", "parallel")),
    )(img_sz, cls_in, reg_in, anc_in)

    scores = scores4.reshape(N, C, L_tot)
    boxes = boxes4.reshape(N, 4, L_tot)
    keep = keep3.reshape(N, L_tot)

    # Per-level clamped candidate counts (padded lanes contribute 0).
    tile_counts = tile_counts[:, :, 0, 0]              # (N, n_tiles)
    counts = []
    t0 = 0
    for nt in tiles_per_level:
        counts.append(jnp.minimum(tile_counts[:, t0:t0 + nt].sum(axis=1),
                                  PRE_NMS_TOP_N))
        t0 += nt
    counts = jnp.stack(counts, axis=0).astype(jnp.int32)  # (num_levels, N)

    # TODO(synk): per-image variable-length topk over candidates + nonzero
    #             gather (dynamic output shapes) are done downstream on host.
    # TODO(synk): ml_nms / fpn_post_nms_top_n kthvalue (select_over_all_levels)
    #             have no static-shape Pallas equivalent.
    return scores, boxes, keep, counts


# ---------------------------------------------------------------------------
# Pure-JAX reference for one level (mirrors the PyTorch dense math).
# ---------------------------------------------------------------------------
def _reference_level(box_cls, box_regression, anchors, image_sizes):
    cls, reg, C, L = _channel_major(box_cls, box_regression)   # (N,C,L), (N,4,L)
    N = cls.shape[0]
    probs = jax.nn.sigmoid(cls)
    counts = jnp.minimum((probs > PRE_NMS_THRESH).reshape(N, -1).sum(1),
                         PRE_NMS_TOP_N).astype(jnp.int32)
    scores = jnp.sqrt(probs)

    a = anchors.astype(jnp.float32)                            # (L, 4)
    widths = a[:, 2] - a[:, 0] + 1.0
    heights = a[:, 3] - a[:, 1] + 1.0
    ctr_x = (a[:, 2] + a[:, 0]) * 0.5
    ctr_y = (a[:, 3] + a[:, 1]) * 0.5
    wx, wy, ww, wh = BOX_CODER_WEIGHTS
    dx = reg[:, 0, :] / wx
    dy = reg[:, 1, :] / wy
    dw = jnp.minimum(reg[:, 2, :] / ww, BBOX_XFORM_CLIP)
    dh = jnp.minimum(reg[:, 3, :] / wh, BBOX_XFORM_CLIP)
    pcx = dx * widths + ctr_x
    pcy = dy * heights + ctr_y
    pw = jnp.exp(dw) * widths
    ph = jnp.exp(dh) * heights
    x1 = pcx - 0.5 * (pw - 1.0)
    y1 = pcy - 0.5 * (ph - 1.0)
    x2 = pcx + 0.5 * (pw - 1.0)
    y2 = pcy + 0.5 * (ph - 1.0)
    img_h = image_sizes[:, 0].astype(jnp.float32)[:, None]
    img_w = image_sizes[:, 1].astype(jnp.float32)[:, None]
    x1 = jnp.clip(x1, 0.0, img_w)
    y1 = jnp.clip(y1, 0.0, img_h)
    x2 = jnp.clip(x2, 0.0, img_w)
    y2 = jnp.clip(y2, 0.0, img_h)
    boxes = jnp.stack([x1, y1, x2, y2], axis=1)                # (N, 4, L)
    keep = (x2 - x1 > MIN_SIZE) & (y2 - y1 > MIN_SIZE)         # (N, L)
    return scores, boxes, counts, keep


def _make_anchors(H, W, stride, size):
    ys = (jnp.arange(H, dtype=jnp.float32) + 0.5) * stride
    xs = (jnp.arange(W, dtype=jnp.float32) + 0.5) * stride
    cy, cx = jnp.meshgrid(ys, xs, indexing="ij")
    cx = cx.reshape(-1)
    cy = cy.reshape(-1)
    half = size / 2.0
    return jnp.stack([cx - half, cy - half, cx + half, cy + half], axis=1)  # (H*W, 4)


if __name__ == "__main__":
    key = jax.random.PRNGKey(0)
    N, A, C = 2, 1, NUM_CLASSES
    level_cfg = [  # (H, W, stride, anchor_size)
        (16, 16, 8, 32.0),
        (8, 8, 16, 64.0),
    ]

    box_cls_levels, box_reg_levels, anchors_levels = [], [], []
    for (H, W, stride, size) in level_cfg:
        key, k1, k2 = jax.random.split(key, 3)
        box_cls_levels.append(
            jax.random.normal(k1, (N, A * C, H, W), dtype=jnp.float32) * 2.0 - 2.0)
        box_reg_levels.append(
            jax.random.normal(k2, (N, A * 4, H, W), dtype=jnp.float32) * 0.5)
        anchors_levels.append(_make_anchors(H, W, stride, size))

    image_sizes = jnp.array([[128, 128], [120, 100]], dtype=jnp.int32)  # (h, w)

    TILE_LANES = 1024
    fused = jax.jit(functools.partial(atss_postprocess, tile_lanes=TILE_LANES))
    scores, boxes, keep, counts = jax.block_until_ready(
        fused(image_sizes, box_cls_levels, box_reg_levels, anchors_levels))

    # Correctness check against the pure-JAX reference (valid lanes per level).
    offsets, valids, _ = _level_layout(box_cls_levels, box_reg_levels, TILE_LANES)
    for lvl, (o, bb, aa) in enumerate(zip(box_cls_levels, box_reg_levels, anchors_levels)):
        ref_scores, ref_boxes, ref_counts, ref_keep = _reference_level(
            o, bb, aa, image_sizes)
        off, L = offsets[lvl], valids[lvl]
        assert scores[:, :, off:off + L].shape == ref_scores.shape
        assert jnp.allclose(scores[:, :, off:off + L], ref_scores, rtol=2e-3, atol=2e-3)
        assert jnp.allclose(boxes[:, :, off:off + L], ref_boxes, rtol=2e-3, atol=2e-2)
        assert bool(jnp.all(keep[:, off:off + L].astype(bool) == ref_keep))
        assert bool(jnp.all(counts[lvl] == ref_counts))
        # padded lanes of this level must never be candidates / kept
        pad_end = off + -(-L // TILE_LANES) * TILE_LANES
        assert bool(jnp.all(scores[:, :, off + L:pad_end] < math.sqrt(PRE_NMS_THRESH)))
        assert bool(jnp.all(keep[:, off + L:pad_end] == 0))

    print("KERNEL_OK")
</pallas_src>

<mosaic_0001>
module attributes {stable_mosaic.version = 11 : i64} {
  func.func @_atss_fused_kernel(%arg0: i32, %arg1: i32, %arg2: memref<2x2xi32, #tpu.memory_space<smem>>, %arg3: memref<1x4x8x128xf32, #tpu.memory_space<vmem>>, %arg4: memref<1x4x8x128xf32, #tpu.memory_space<vmem>>, %arg5: memref<4x8x128xf32, #tpu.memory_space<vmem>>, %arg6: memref<1x4x8x128xf32, #tpu.memory_space<vmem>>, %arg7: memref<1x4x8x128xf32, #tpu.memory_space<vmem>>, %arg8: memref<1x8x128xi32, #tpu.memory_space<vmem>>, %arg9: memref<1x1x1x1xi32, #tpu.memory_space<vmem>>) attributes {dimension_semantics = [#tpu.dimension_semantics<parallel>, #tpu.dimension_semantics<parallel>], iteration_bounds = array<i64: 2, 2>, scalar_prefetch = 1 : i64, scratch_operands = 0 : i64, tpu.core_type = #tpu.core_type<tc>, window_params = [{transform_indices = @transform_0, window_bounds = array<i64: 1, 4, 8, 128>}, {transform_indices = @transform_1, window_bounds = array<i64: 1, 4, 8, 128>}, {transform_indices = @transform_2, window_bounds = array<i64: 4, 8, 128>}, {transform_indices = @transform_3, window_bounds = array<i64: 1, 4, 8, 128>}, {transform_indices = @transform_4, window_bounds = array<i64: 1, 4, 8, 128>}, {transform_indices = @transform_5, window_bounds = array<i64: 1, 8, 128>}, {transform_indices = @transform_6, window_bounds = array<i64: 1, 1, 1, 1>}]} {
    %c0 = arith.constant 0 : index
    %c0_0 = arith.constant 0 : index
    %c0_1 = arith.constant 0 : index
    %c0_2 = arith.constant 0 : index
    %0 = vector.load %arg3[%c0, %c0_0, %c0_1, %c0_2] : memref<1x4x8x128xf32, #tpu.memory_space<vmem>>, vector<1x4x8x128xf32>
    %1 = vector.shape_cast %0 : vector<1x4x8x128xf32> to vector<4x8x128xf32>
    %2 = arith.negf %1 : vector<4x8x128xf32>
    %3 = math.exp %2 : vector<4x8x128xf32>
    %cst = arith.constant 1.000000e+00 : f32
    %4 = vector.broadcast %cst : f32 to vector<4x8x128xf32>
    %5 = arith.addf %4, %3 : vector<4x8x128xf32>
    %6 = arith.divf %4, %5 : vector<4x8x128xf32>
    %7 = math.sqrt %6 : vector<4x8x128xf32>
    %c0_3 = arith.constant 0 : index
    %c0_4 = arith.constant 0 : index
    %c0_5 = arith.constant 0 : index
    %c0_6 = arith.constant 0 : index
    %8 = vector.load %arg6[%c0_3, %c0_4, %c0_5, %c0_6] : memref<1x4x8x128xf32, #tpu.memory_space<vmem>>, vector<1x4x8x128xf32>
    %9 = vector.shape_cast %8 : vector<1x4x8x128xf32> to vector<4x8x128xf32>
    %10 = vector.shape_cast %7 : vector<4x8x128xf32> to vector<1x4x8x128xf32>
    tpu.vector_store %arg6[%c0_3, %c0_4, %c0_5, %c0_6], %10 {strides = array<i32>} : memref<1x4x8x128xf32, #tpu.memory_space<vmem>>, vector<1x4x8x128xf32>,
    %cst_7 = arith.constant 5.000000e-02 : f32
    %11 = vector.broadcast %cst_7 : f32 to vector<4x8x128xf32>
    %12 = arith.cmpf ogt, %6, %11 : vector<4x8x128xf32>
    %13 = arith.extui %12 : vector<4x8x128xi1> to vector<4x8x128xi32>
    %14 = vector.shape_cast %13 : vector<4x8x128xi32> to vector<1x4x8x128xi32>
    %cst_8 = arith.constant dense<0> : vector<1xi32>
    %15 = vector.multi_reduction <add>, %14, %cst_8 [1, 2, 3] : vector<1x4x8x128xi32> to vector<1xi32>
    %16 = vector.shape_cast %15 : vector<1xi32> to vector<1x1x1x1xi32>
    %17 = vector.extract %16[0, 0, 0, 0] : i32 from vector<1x1x1x1xi32>
    %18 = vector.broadcast %17 : i32 to vector<1x1x1x1xi32>
    %c0_9 = arith.constant 0 : index
    %c0_10 = arith.constant 0 : index
    %c0_11 = arith.constant 0 : index
    %c0_12 = arith.constant 0 : index
    %19 = vector.load %arg9[%c0_9, %c0_10, %c0_11, %c0_12] : memref<1x1x1x1xi32, #tpu.memory_space<vmem>>, vector<1x1x1x1xi32>
    tpu.vector_store %arg9[%c0_9, %c0_10, %c0_11, %c0_12], %18 {strides = array<i32>} : memref<1x1x1x1xi32, #tpu.memory_space<vmem>>, vector<1x1x1x1xi32>,
    %c0_13 = arith.constant 0 : index
    %c0_14 = arith.constant 0 : index
    %c0_15 = arith.constant 0 : index
    %20 = vector.load %arg5[%c0_13, %c0_14, %c0_15] : memref<4x8x128xf32, #tpu.memory_space<vmem>>, vector<1x8x128xf32>
    %21 = vector.shape_cast %20 : vector<1x8x128xf32> to vector<8x128xf32>
    %c1 = arith.constant 1 : index
    %c0_16 = arith.constant 0 : index
    %c0_17 = arith.constant 0 : index
    %22 = vector.load %arg5[%c1, %c0_16, %c0_17] : memref<4x8x128xf32, #tpu.memory_space<vmem>>, vector<1x8x128xf32>
    %23 = vector.shape_cast %22 : vector<1x8x128xf32> to vector<8x128xf32>
    %c2 = arith.constant 2 : index
    %c0_18 = arith.constant 0 : index
    %c0_19 = arith.constant 0 : index
    %24 = vector.load %arg5[%c2, %c0_18, %c0_19] : memref<4x8x128xf32, #tpu.memory_space<vmem>>, vector<1x8x128xf32>
    %25 = vector.shape_cast %24 : vector<1x8x128xf32> to vector<8x128xf32>
    %c3 = arith.constant 3 : index
    %c0_20 = arith.constant 0 : index
    %c0_21 = arith.constant 0 : index
    %26 = vector.load %arg5[%c3, %c0_20, %c0_21] : memref<4x8x128xf32, #tpu.memory_space<vmem>>, vector<1x8x128xf32>
    %27 = vector.shape_cast %26 : vector<1x8x128xf32> to vector<8x128xf32>
    %c0_22 = arith.constant 0 : index
    %c0_23 = arith.constant 0 : index
    %c0_24 = arith.constant 0 : index
    %c0_25 = arith.constant 0 : index
    %28 = vector.load %arg4[%c0_22, %c0_23, %c0_24, %c0_25] : memref<1x4x8x128xf32, #tpu.memory_space<vmem>>, vector<1x1x8x128xf32>
    %29 = vector.shape_cast %28 : vector<1x1x8x128xf32> to vector<8x128xf32>
    %cst_26 = arith.constant 1.000000e+01 : f32
    %30 = vector.broadcast %cst_26 : f32 to vector<8x128xf32>
    %31 = arith.divf %29, %30 : vector<8x128xf32>
    %c0_27 = arith.constant 0 : index
    %c1_28 = arith.constant 1 : index
    %c0_29 = arith.constant 0 : index
    %c0_30 = arith.constant 0 : index
    %32 = vector.load %arg4[%c0_27, %c1_28, %c0_29, %c0_30] : memref<1x4x8x128xf32, #tpu.memory_space<vmem>>, vector<1x1x8x128xf32>
    %33 = vector.shape_cast %32 : vector<1x1x8x128xf32> to vector<8x128xf32>
    %cst_31 = arith.constant 1.000000e+01 : f32
    %34 = vector.broadcast %cst_31 : f32 to vector<8x128xf32>
    %35 = arith.divf %33, %34 : vector<8x128xf32>
    %c0_32 = arith.constant 0 : index
    %c2_33 = arith.constant 2 : index
    %c0_34 = arith.constant 0 : index
    %c0_35 = arith.constant 0 : index
    %36 = vector.load %arg4[%c0_32, %c2_33, %c0_34, %c0_35] : memref<1x4x8x128xf32, #tpu.memory_space<vmem>>, vector<1x1x8x128xf32>
    %37 = vector.shape_cast %36 : vector<1x1x8x128xf32> to vector<8x128xf32>
    %cst_36 = arith.constant 5.000000e+00 : f32
    %38 = vector.broadcast %cst_36 : f32 to vector<8x128xf32>
    %39 = arith.divf %37, %38 : vector<8x128xf32>
    %cst_37 = arith.constant 4.13516665 : f32
    %40 = vector.broadcast %cst_37 : f32 to vector<8x128xf32>
    %41 = arith.minimumf %39, %40 : vector<8x128xf32>
    %c0_38 = arith.constant 0 : index
    %c3_39 = arith.constant 3 : index
    %c0_40 = arith.constant 0 : index
    %c0_41 = arith.constant 0 : index
    %42 = vector.load %arg4[%c0_38, %c3_39, %c0_40, %c0_41] : memref<1x4x8x128xf32, #tpu.memory_space<vmem>>, vector<1x1x8x128xf32>
    %43 = vector.shape_cast %42 : vector<1x1x8x128xf32> to vector<8x128xf32>
    %cst_42 = arith.constant 5.000000e+00 : f32
    %44 = vector.broadcast %cst_42 : f32 to vector<8x128xf32>
    %45 = arith.divf %43, %44 : vector<8x128xf32>
    %cst_43 = arith.constant 4.13516665 : f32
    %46 = vector.broadcast %cst_43 : f32 to vector<8x128xf32>
    %47 = arith.minimumf %45, %46 : vector<8x128xf32>
    %48 = arith.mulf %31, %25 : vector<8x128xf32>
    %49 = arith.addf %48, %21 : vector<8x128xf32>
    %50 = arith.mulf %35, %27 : vector<8x128xf32>
    %51 = arith.addf %50, %23 : vector<8x128xf32>
    %52 = math.exp %41 : vector<8x128xf32>
    %53 = arith.mulf %52, %25 : vector<8x128xf32>
    %cst_44 = arith.constant 1.000000e+00 : f32
    %54 = vector.broadcast %cst_44 : f32 to vector<8x128xf32>
    %55 = arith.subf %53, %54 : vector<8x128xf32>
    %cst_45 = arith.constant 5.000000e-01 : f32
    %56 = vector.broadcast %cst_45 : f32 to vector<8x128xf32>
    %57 = arith.mulf %56, %55 : vector<8x128xf32>
    %58 = math.exp %47 : vector<8x128xf32>
    %59 = arith.mulf %58, %27 : vector<8x128xf32>
    %cst_46 = arith.constant 1.000000e+00 : f32
    %60 = vector.broadcast %cst_46 : f32 to vector<8x128xf32>
    %61 = arith.subf %59, %60 : vector<8x128xf32>
    %cst_47 = arith.constant 5.000000e-01 : f32
    %62 = vector.broadcast %cst_47 : f32 to vector<8x128xf32>
    %63 = arith.mulf %62, %61 : vector<8x128xf32>
    %64 = arith.subf %49, %57 : vector<8x128xf32>
    %65 = arith.subf %51, %63 : vector<8x128xf32>
    %66 = arith.addf %49, %57 : vector<8x128xf32>
    %67 = arith.addf %51, %63 : vector<8x128xf32>
    %68 = arith.index_cast %arg1 : i32 to index
    %c0_48 = arith.constant 0 : index
    %69 = memref.load %arg2[%68, %c0_48] : memref<2x2xi32, #tpu.memory_space<smem>>
    %70 = arith.sitofp %69 : i32 to f32
    %71 = arith.index_cast %arg1 : i32 to index
    %c1_49 = arith.constant 1 : index
    %72 = memref.load %arg2[%71, %c1_49] : memref<2x2xi32, #tpu.memory_space<smem>>
    %73 = arith.sitofp %72 : i32 to f32
    %cst_50 = arith.constant 0.000000e+00 : f32
    %74 = vector.broadcast %cst_50 : f32 to vector<8x128xf32>
    %75 = arith.maximumf %74, %64 : vector<8x128xf32>
    %76 = vector.broadcast %73 : f32 to vector<8x128xf32>
    %77 = arith.minimumf %76, %75 : vector<8x128xf32>
    %cst_51 = arith.constant 0.000000e+00 : f32
    %78 = vector.broadcast %cst_51 : f32 to vector<8x128xf32>
    %79 = arith.maximumf %78, %65 : vector<8x128xf32>
    %80 = vector.broadcast %70 : f32 to vector<8x128xf32>
    %81 = arith.minimumf %80, %79 : vector<8x128xf32>
    %cst_52 = arith.constant 0.000000e+00 : f32
    %82 = vector.broadcast %cst_52 : f32 to vector<8x128xf32>
    %83 = arith.maximumf %82, %66 : vector<8x128xf32>
    %84 = vector.broadcast %73 : f32 to vector<8x128xf32>
    %85 = arith.minimumf %84, %83 : vector<8x128xf32>
    %cst_53 = arith.constant 0.000000e+00 : f32
    %86 = vector.broadcast %cst_53 : f32 to vector<8x128xf32>
    %87 = arith.maximumf %86, %67 : vector<8x128xf32>
    %88 = vector.broadcast %70 : f32 to vector<8x128xf32>
    %89 = arith.minimumf %88, %87 : vector<8x128xf32>
    %c0_54 = arith.constant 0 : index
    %c0_55 = arith.constant 0 : index
    %c0_56 = arith.constant 0 : index
    %c0_57 = arith.constant 0 : index
    %90 = vector.load %arg7[%c0_54, %c0_55, %c0_56, %c0_57] : memref<1x4x8x128xf32, #tpu.memory_space<vmem>>, vector<1x1x8x128xf32>
    %91 = vector.shape_cast %90 : vector<1x1x8x128xf32> to vector<8x128xf32>
    %92 = vector.shape_cast %77 : vector<8x128xf32> to vector<1x1x8x128xf32>
    tpu.vector_store %arg7[%c0_54, %c0_55, %c0_56, %c0_57], %92 {strides = array<i32>} : memref<1x4x8x128xf32, #tpu.memory_space<vmem>>, vector<1x1x8x128xf32>,
    %c0_58 = arith.constant 0 : index
    %c1_59 = arith.constant 1 : index
    %c0_60 = arith.constant 0 : index
    %c0_61 = arith.constant 0 : index
    %93 = vector.load %arg7[%c0_58, %c1_59, %c0_60, %c0_61] : memref<1x4x8x128xf32, #tpu.memory_space<vmem>>, vector<1x1x8x128xf32>
    %94 = vector.shape_cast %93 : vector<1x1x8x128xf32> to vector<8x128xf32>
    %95 = vector.shape_cast %81 : vector<8x128xf32> to vector<1x1x8x128xf32>
    tpu.vector_store %arg7[%c0_58, %c1_59, %c0_60, %c0_61], %95 {strides = array<i32>} : memref<1x4x8x128xf32, #tpu.memory_space<vmem>>, vector<1x1x8x128xf32>,
    %c0_62 = arith.constant 0 : index
    %c2_63 = arith.constant 2 : index
    %c0_64 = arith.constant 0 : index
    %c0_65 = arith.constant 0 : index
    %96 = vector.load %arg7[%c0_62, %c2_63, %c0_64, %c0_65] : memref<1x4x8x128xf32, #tpu.memory_space<vmem>>, vector<1x1x8x128xf32>
    %97 = vector.shape_cast %96 : vector<1x1x8x128xf32> to vector<8x128xf32>
    %98 = vector.shape_cast %85 : vector<8x128xf32> to vector<1x1x8x128xf32>
    tpu.vector_store %arg7[%c0_62, %c2_63, %c0_64, %c0_65], %98 {strides = array<i32>} : memref<1x4x8x128xf32, #tpu.memory_space<vmem>>, vector<1x1x8x128xf32>,
    %c0_66 = arith.constant 0 : index
    %c3_67 = arith.constant 3 : index
    %c0_68 = arith.constant 0 : index
    %c0_69 = arith.constant 0 : index
    %99 = vector.load %arg7[%c0_66, %c3_67, %c0_68, %c0_69] : memref<1x4x8x128xf32, #tpu.memory_space<vmem>>, vector<1x1x8x128xf32>
    %100 = vector.shape_cast %99 : vector<1x1x8x128xf32> to vector<8x128xf32>
    %101 = vector.shape_cast %89 : vector<8x128xf32> to vector<1x1x8x128xf32>
    tpu.vector_store %arg7[%c0_66, %c3_67, %c0_68, %c0_69], %101 {strides = array<i32>} : memref<1x4x8x128xf32, #tpu.memory_space<vmem>>, vector<1x1x8x128xf32>,
    %102 = arith.subf %85, %77 : vector<8x128xf32>
    %cst_70 = arith.constant 0.000000e+00 : f32
    %103 = vector.broadcast %cst_70 : f32 to vector<8x128xf32>
    %104 = arith.cmpf ogt, %102, %103 : vector<8x128xf32>
    %105 = arith.subf %89, %81 : vector<8x128xf32>
    %cst_71 = arith.constant 0.000000e+00 : f32
    %106 = vector.broadcast %cst_71 : f32 to vector<8x128xf32>
    %107 = arith.cmpf ogt, %105, %106 : vector<8x128xf32>
    %108 = arith.andi %104, %107 : vector<8x128xi1>
    %109 = arith.extui %108 : vector<8x128xi1> to vector<8x128xi32>
    %c0_72 = arith.constant 0 : index
    %c0_73 = arith.constant 0 : index
    %c0_74 = arith.constant 0 : index
    %110 = vector.load %arg8[%c0_72, %c0_73, %c0_74] : memref<1x8x128xi32, #tpu.memory_space<vmem>>, vector<1x8x128xi32>
    %111 = vector.shape_cast %110 : vector<1x8x128xi32> to vector<8x128xi32>
    %112 = vector.shape_cast %109 : vector<8x128xi32> to vector<1x8x128xi32>
    tpu.vector_store %arg8[%c0_72, %c0_73, %c0_74], %112 {strides = array<i32>} : memref<1x8x128xi32, #tpu.memory_space<vmem>>, vector<1x8x128xi32>,
    return
  }
  func.func @transform_0(%arg0: i32, %arg1: i32, %arg2: memref<2x2xi32, #tpu.memory_space<smem>>) -> (i32, i32, i32, i32) {
    %c0_i32 = arith.constant 0 : i32
    %c0_i32_0 = arith.constant 0 : i32
    %c0_i32_1 = arith.constant 0 : i32
    return %arg1, %c0_i32, %arg0, %c0_i32_0 : i32, i32, i32, i32
  }
  func.func @transform_1(%arg0: i32, %arg1: i32, %arg2: memref<2x2xi32, #tpu.memory_space<smem>>) -> (i32, i32, i32, i32) {
    %c0_i32 = arith.constant 0 : i32
    %c0_i32_0 = arith.constant 0 : i32
    %c0_i32_1 = arith.constant 0 : i32
    return %arg1, %c0_i32, %arg0, %c0_i32_0 : i32, i32, i32, i32
  }
  func.func @transform_2(%arg0: i32, %arg1: i32, %arg2: memref<2x2xi32, #tpu.memory_space<smem>>) -> (i32, i32, i32) {
    %c0_i32 = arith.constant 0 : i32
    %c0_i32_0 = arith.constant 0 : i32
    %c0_i32_1 = arith.constant 0 : i32
    return %c0_i32, %arg0, %c0_i32_0 : i32, i32, i32
  }
  func.func @transform_3(%arg0: i32, %arg1: i32, %arg2: memref<2x2xi32, #tpu.memory_space<smem>>) -> (i32, i32, i32, i32) {
    %c0_i32 = arith.constant 0 : i32
    %c0_i32_0 = arith.constant 0 : i32
    %c0_i32_1 = arith.constant 0 : i32
    return %arg1, %c0_i32, %arg0, %c0_i32_0 : i32, i32, i32, i32
  }
  func.func @transform_4(%arg0: i32, %arg1: i32, %arg2: memref<2x2xi32, #tpu.memory_space<smem>>) -> (i32, i32, i32, i32) {
    %c0_i32 = arith.constant 0 : i32
    %c0_i32_0 = arith.constant 0 : i32
    %c0_i32_1 = arith.constant 0 : i32
    return %arg1, %c0_i32, %arg0, %c0_i32_0 : i32, i32, i32, i32
  }
  func.func @transform_5(%arg0: i32, %arg1: i32, %arg2: memref<2x2xi32, #tpu.memory_space<smem>>) -> (i32, i32, i32) {
    %c0_i32 = arith.constant 0 : i32
    %c0_i32_0 = arith.constant 0 : i32
    return %arg1, %arg0, %c0_i32 : i32, i32, i32
  }
  func.func @transform_6(%arg0: i32, %arg1: i32, %arg2: memref<2x2xi32, #tpu.memory_space<smem>>) -> (i32, i32, i32, i32) {
    %c0_i32 = arith.constant 0 : i32
    %c0_i32_0 = arith.constant 0 : i32
    %c0_i32_1 = arith.constant 0 : i32
    return %arg1, %arg0, %c0_i32, %c0_i32_0 : i32, i32, i32, i32
  }
}

</mosaic_0001>

<bundles_post_ra>
// kernel: atss_postprocess.1
= control target key start
LH: loop header
LB: loop body
LE: loop exit
PB: predicated region body
PF: predicated region fallthrough
CT: control target
= control target key end

     0   :  { %s1495_s0 = inlined_call_operand.vmem [shape: s32[2,2], index: 0, kind: input, shape index: {}]   ;;  %s1496_s1 = inlined_call_operand.vmem [shape: f32[2,4,16,128], index: 1, kind: input, shape index: {}]   ;;  %s1497_s2 = inlined_call_operand.vmem [shape: f32[2,4,16,128], index: 2, kind: input, shape index: {}]   ;;  %s1498_s3 = inlined_call_operand.vmem [shape: f32[4,16,128], index: 3, kind: input, shape index: {}]   ;;  %s1499_s4 = inlined_call_operand.vmem [shape: f32[2,4,16,128], index: 4, kind: output, shape index: {0}]   ;;  %s1500_s5 = inlined_call_operand.vmem [shape: f32[2,4,16,128], index: 5, kind: output, shape index: {1}]   ;;  %s1501_s6 = inlined_call_operand.vmem [shape: s32[2,16,128], index: 6, kind: output, shape index: {2}]   ;;  %s1502_s7 = inlined_call_operand.vmem [shape: s32[2,2,1,1], index: 7, kind: output, shape index: {3}]  }
   0x1   :  { %1504 = sst [smem:[#allocation11_spill]] %s1496_s1  ;;  %s13_s26 = sshll.u32 %s1495_s0, 4  ;;  %s14_s26 = int_to_ptr.vmem [resolvable:$true] %s13_s26 }
   0x2   :  { %s1150_s27 = scalar_lea.vmem %s14_s26, 32  ;;  %p1155_p1 = scmp.lt.s32.totalorder %s14_s26, %s14_s26 }
   0x3   :  { %p1151_p0 = scmp.ne.s32.totalorder %s14_s26, %s1150_s27  ;;  %p1156_p2 = scmp.lt.s32.totalorder %s1150_s27, %s1150_s27 }
   0x5   :  { %p1157_p3 = por %p1156_p2, %p1155_p1 }
   0x7   :  { %p1158_p4 = pnand %p1157_p3, %p1151_p0 }
   0x9   :  { %1161 = shalt.err (!%p1158_p4)  }
   0xa   :  { %s1236_s28 = smov [#allocation3]  }
   0xb   :  { %16 = dma.vmem_to_smem %s14_s26, 32, %s1236_s28, [#allocation2] }
   0xc   :  { %1198 = dma.done.wait [#allocation2], 32 }
   0xd   :  { %1199 = vsyncadd [#allocation2], 4294967264 }
   0xe   :  { %18 = sfence }
   0xf   :  { %s1281_s29 = smov 0   ;;  %s1283_s30 = smov 0  }
  0x10   :  { %s1285_s8 = smov 0   ;;  %s1287_s0 = smov 0  }
  0x11   :  { %s1289_s9 = smov 0   ;;  %s1291_s10 = smov 0  }
  0x12   :  { %s1293_s11 = smov 0   ;;  %s1295_s12 = smov 0  }
  0x13   :  { %s1297_s13 = smov 0  }
  0x14 LB: > { %s33_s14 = sadd.s32 1, %s1226_s11  ;;  %s36_s15 = sadd.s32 1, %s1230_s12  ;;  %s1234_s13 = sphi %s1297_s13, %s24_s13   ;;  %s1230_s12 = sphi %s1295_s12, %s1518_s12   ;;  %s1226_s11 = sphi %s1293_s11, %s1517_s11   ;;  %s1222_s10 = sphi %s1291_s10, %s1516_s10   ;;  %s1218_s9 = sphi %s1289_s9, %s1515_s9   ;;  %s1214_s0 = sphi %s1287_s0, %s1514_s0   ;;  %s1210_s8 = sphi %s1285_s8, %s1513_s8   ;;  %s1206_s30 = sphi %s1283_s30, %s1512_s30   ;;  %s1202_s29 = sphi %s1281_s29, %s1511_s29  }
  0x15   : > { %p34_p5 = scmp.ge.s32.totalorder %s33_s14, 2  ;;  %s1001_s16 = sadd.s32 4294967295, %s1234_s13  }
  0x16   : > { %p52_p6 = scmp.ne.s32.totalorder %s1214_s0, %s1210_s8  ;;  %s45_s17 = sadd.s32 1, %s1214_s0 }
  0x17   : > { %s1520_s14 = smov (%p34_p5, %s33_s14), 0  ;;  %s1522_s15 = smov (!%p34_p5, %s36_s15), %s1230_s12 }
  0x18   : > { %p53_p7 = scmp.eq.s32.totalorder %s1234_s13, 0  ;;  %p38_p8 = scmp.ge.s32.totalorder %s1522_s15, 2 }
  0x19   : > { %s40_s18 = ssub.s32 %s1226_s11, %s1520_s14  ;;  %p106_p10 = scmp.ne.s32.totalorder %s1206_s30, %s1202_s29 }
  0x1a   : > { %p1341_p9 = por %p53_p7, %p52_p6  ;;  %s1524_s15 = smov (%p38_p8, %s1522_s15), 0 }
  0x1b   : > { %1506 = sst [smem:[#allocation10_spill]] %s1524_s15  ;;  %p1349_p11 = por %p106_p10, %p53_p7 }
  0x1c   : > { %p138_p12 = scmp.eq.s32.totalorder %s1001_s16, 3  ;;  %s41_s21 = ssub.s32 %s1230_s12, %s1524_s15 }
  0x1d   : > { %s99_s22 = sadd.s32 1, %s1206_s30  ;;  %s42_s23 = sor.u32 %s41_s21, %s40_s18 }
  0x1e   : > { %p97_p13 = scmp.eq.s32.totalorder %s41_s21, 0  ;;  %p43_p0 = scmp.eq.s32.totalorder %s42_s23, 0 }
  0x1f   : > { %p1359_p1 = por %p138_p12, %p52_p6  ;;  %p1004_p2 = scmp.ge.s32.totalorder %s1234_s13, 4 }
  0x20   : > { %s1364_s25 = scalar_select %p97_p13, %s1206_s30, %s99_s22  }
  0x21   : > { %s1367_s26 = scalar_select %p43_p0, %s1214_s0, %s45_s17  }
  0x22   : > { %244 = sbr.rel (%p1004_p2) target bundleno = 68 (0x44), region = 16 }
  0x29   : > { %247 = sbr.rel (!%p1341_p9) target bundleno = 53 (0x35), region = 20  ;;  %s249_s27 = sand.u32 (%p1341_p9), 1, %s1214_s0  }
  0x2a   : > { %s1006_s28 = sshll.u32 (%p1341_p9), %s1226_s11, 3  ;;  %s1005_s16 = sshll.u32 (%p1341_p9), %s249_s27, 5 }
  0x2b   : > { %s253_s18 = sadd.s32 (%p1341_p9), %s1230_s12, %s1006_s28  ;;  %s1509_s1 = sld [smem:[#allocation11_spill]] (%p1341_p9) }
  0x2c   : > { %s1007_s21 = sshll.u32 (%p1341_p9), %s253_s18, 3  ;;  %s251_s17 = scalar_lea.vmem (%p1341_p9), [#allocation4], %s1005_s16 }
  0x31   : > { %s255_s22 = scalar_lea.vmem %s1509_s1, %s1007_s21 }
  0x32   : > { %v289_v0 = vld [vmem:[%s255_s22] sm:$0xff]  ;;  %v291_v1 = vld [vmem:[%s255_s22 + $0x10] sm:$0xff] }
  0x33   : > { %v293_v2 = vld [vmem:[%s255_s22 + $0x20] sm:$0xff]  ;;  %290 = vst [vmem:[%s251_s17] sm:$0xff] %v289_v0  ;;  %292 = vst [vmem:[%s251_s17 + $0x8] sm:$0xff] %v291_v1  ;;  %v295_v3 = vld [vmem:[%s255_s22 + $0x30] sm:$0xff] }
  0x34   : > { %294 = vst [vmem:[%s251_s17 + $0x10] sm:$0xff] %v293_v2  ;;  %296 = vst [vmem:[%s251_s17 + $0x18] sm:$0xff] %v295_v3 }
  0x35 PF: > { %302 = sbr.rel (!%p1341_p9) target bundleno = 61 (0x3d), region = 58  ;;  %s304_s27 = sand.u32 (%p1341_p9), 1, %s1214_s0  }
  0x36   : > { %s1009_s28 = sshll.u32 (%p1341_p9), %s1226_s11, 3  ;;  %s1008_s15 = sshll.u32 (%p1341_p9), %s304_s27, 5 }
  0x37   : > { %s308_s18 = sadd.s32 (%p1341_p9), %s1230_s12, %s1009_s28  ;;  %s306_s22 = scalar_lea.vmem (%p1341_p9), [#allocation5], %s1008_s15 }
  0x38   : > { %s1010_s21 = sshll.u32 (%p1341_p9), %s308_s18, 3 }
  0x39   : > { %s310_s16 = scalar_lea.vmem (%p1341_p9), %s1497_s2, %s1010_s21 }
  0x3a   : > { %v344_v4 = vld [vmem:[%s310_s16] sm:$0xff] (%p1341_p9)  ;;  %v346_v5 = vld [vmem:[%s310_s16 + $0x10] sm:$0xff] (%p1341_p9) }
  0x3b   : > { %v348_v6 = vld [vmem:[%s310_s16 + $0x20] sm:$0xff] (%p1341_p9)  ;;  %345 = vst [vmem:[%s306_s22] sm:$0xff] (%p1341_p9), %v344_v4  ;;  %347 = vst [vmem:[%s306_s22 + $0x8] sm:$0xff] (%p1341_p9), %v346_v5  ;;  %v350_v7 = vld [vmem:[%s310_s16 + $0x30] sm:$0xff] (%p1341_p9) }
  0x3c   : > { %349 = vst [vmem:[%s306_s22 + $0x10] sm:$0xff] %v348_v6  ;;  %351 = vst [vmem:[%s306_s22 + $0x18] sm:$0xff] %v350_v7 }
  0x3d PF: > { %357 = sbr.rel (!%p1349_p11) target bundleno = 68 (0x44), region = 96  ;;  %s359_s19 = sand.u32 (%p1349_p11), 1, %s1206_s30  }
  0x3e   : > { %s1012_s17 = sshll.u32 (%p1349_p11), %s1230_s12, 3  ;;  %s1011_s27 = sshll.u32 (%p1349_p11), %s359_s19, 5 }
  0x3f   : > { %s363_s18 = scalar_lea.vmem (%p1349_p11), %s1498_s3, %s1012_s17  ;;  %s361_s15 = scalar_lea.vmem (%p1349_p11), [#allocation6], %s1011_s27 }
  0x40   : > { %v397_v8 = vld [vmem:[%s363_s18] sm:$0xff] (%p1349_p11)  ;;  %v399_v9 = vld [vmem:[%s363_s18 + $0x10] sm:$0xff] (%p1349_p11) }
  0x41   : > { %v401_v10 = vld [vmem:[%s363_s18 + $0x20] sm:$0xff] (%p1349_p11)  ;;  %398 = vst [vmem:[%s361_s15] sm:$0xff] (%p1349_p11), %v397_v8  ;;  %400 = vst [vmem:[%s361_s15 + $0x8] sm:$0xff] (%p1349_p11), %v399_v9  ;;  %v403_v11 = vld [vmem:[%s363_s18 + $0x30] sm:$0xff] (%p1349_p11) }
  0x42   : > { %402 = vst [vmem:[%s361_s15 + $0x10] sm:$0xff] (%p1349_p11), %v401_v10  ;;  %404 = vst [vmem:[%s361_s15 + $0x18] sm:$0xff] (%p1349_p11), %v403_v11 }
  0x44 PF: > { %p1013_p3 = scmp.ge.s32.totalorder %s1234_s13, 1  ;;  %p409_p4 = scmp.lt.s32.totalorder %s1234_s13, 5 }
  0x46   : > { %p410_p5 = pnand %p1013_p3, %p409_p4 }
  0x47   : > { %s416_s20 = sand.u32 (!%p410_p5), 1, %s1210_s8   ;;  %v1237_v32 = vmov (!%p410_p5), 0   ;;  %s430_s22 = sand.u32 (!%p410_p5), 1, %s1202_s29   ;;  %vm591_vm15 = vcmask (!%p410_p5), 0  }
  0x48   : > { %413 = sbr.rel (%p410_p5) target bundleno = 335 (0x14f), region = 134  ;;  %s1396_s21 = sshll.u32 (!%p410_p5), %s416_s20, 5 }
  0x49   : > { %s418_s23 = scalar_lea.vmem (!%p410_p5), [#allocation4], %s1396_s21  ;;  %s1409_s8 = scalar_lea.vmem (!%p410_p5), [#allocation7], %s1396_s21 }
  0x4a   : > { %v500_v12 = vld [vmem:[%s418_s23] sm:$0xff] (!%p410_p5)  ;;  %v501_v13 = vld [vmem:[%s418_s23 + $0x8] sm:$0xff] (!%p410_p5)  ;;  %v502_v14 = vld [vmem:[%s418_s23 + $0x10] sm:$0xff] (!%p410_p5)  ;;  %s425_s16 = scalar_lea.vmem (!%p410_p5), [#allocation5], %s1396_s21  ;;  %s1016_s19 = sshll.u32 (!%p410_p5), %s430_s22, 5 }
  0x4b   : > { %v503_v15 = vld [vmem:[%s418_s23 + $0x18] sm:$0xff] (!%p410_p5)  ;;  %v1022_v16 = vmul.f32 (!%p410_p5), -1.442695, %v500_v12  ;;  %v1023_v17 = vmul.f32 (!%p410_p5), -1.442695, %v501_v13  ;;  %v1030_v0 = vld [vmem:[%s425_s16 + $0x10] sm:$0xff] (!%p410_p5) }
  0x4c   : > { %v1024_v18 = vmul.f32 (!%p410_p5), -1.442695, %v502_v14  ;;  %v1025_v19 = vmul.f32 (!%p410_p5), -1.442695, %v503_v15  ;;  %v1031_v1 = vld [vmem:[%s425_s16 + $0x18] sm:$0xff] (!%p410_p5)  ;;  %p485_p6 = scmp.lt.s32.totalorder (!%p410_p5), %s1218_s9, 1 }
  0x4d   : > { %1122 = vpow2.f32 (!%p410_p5), %v1022_v16  ;;  %v609_v2 = vmul.f32 (!%p410_p5), 0.2, %v1030_v0  ;;  %v613_v3 = vmul.f32 (!%p410_p5), 0.2, %v1031_v1  ;;  %s432_s17 = scalar_lea.vmem (!%p410_p5), [#allocation6], %s1016_s19  ;;  %v600_v11 = vld [vmem:[%s425_s16] sm:$0xff] (!%p410_p5) }
  0x4e   : > { %1124 = vpow2.f32 (!%p410_p5), %v1023_v17  ;;  %v1027_v9 = vld [vmem:[%s432_s17 + $0x10] sm:$0xff] (!%p410_p5)  ;;  %v1028_v10 = vld [vmem:[%s432_s17 + $0x18] sm:$0xff] (!%p410_p5)  ;;  %s1034_s27 = sshll.u32 (!%p410_p5), %s1218_s9, 7  ;;  %p487_p7 = scmp.lt.s32.totalorder (!%p410_p5), %s1222_s10, 1  ;;  %v602_v13 = vmul.f32 (!%p410_p5), 0.1, %v600_v11 }
  0x4f   : > { %1126 = vpow2.f32 %v1024_v18  ;;  %v610_v4 = vmin.f32 %v609_v2, 4.1351666  ;;  %v614_v5 = vmin.f32 %v613_v3, 4.1351666  ;;  %v1029_v14 = vld [vmem:[%s425_s16 + $0x8] sm:$0xff]  ;;  %s636_s1 = sadd.s32 1, %s1034_s27 }
  0x50   : > { %1128 = vpow2.f32 %v1025_v19  ;;  %v605_v16 = vmul.f32 0.1, %v1029_v14  ;;  %s634_s29 = sld [smem:[#allocation3 + %s1034_s27]]  ;;  %v615_v18 = vmul.f32 %v1027_v9, %v602_v13 }
  0x51   : > { %v619_v6 = vmul.f32 1.442695, %v610_v4  ;;  %v624_v7 = vmul.f32 1.442695, %v614_v5  ;;  %s637_s28 = sld [smem:[#allocation3 + %s636_s1]] }
  0x52   : > { %s486_s18 = scalar_select %p485_p6, %s1218_s9, 1 }
  0x53   : > { %s488_s15 = scalar_select %p487_p7, %s1222_s10, 1 }
  0x54   : > { %s1019_s20 = sshll.u32 %s486_s18, 1 }
  0x55   : > { %s1428_s22 = sadd.s32 %s1019_s20, %s488_s15  ;;  %s1040_s20 = sshll.u32 (%p1359_p1), %s1218_s9, 3 }
  0x56   : > { %s635_s23 = scvt.s32.f32 %s634_s29  ;;  %s1020_s19 = sshll.u32 %s1428_s22, 3 }
  0x57   : > { %v1123_v20 = vpop.eup %1122  ;;  %s638_s16 = scvt.s32.f32 %s637_s28  ;;  %s492_s29 = scalar_lea.vmem %s1501_s6, %s1020_s19 }
  0x58   : > { %v1125_v21 = vpop.eup %1124  ;;  %v516_v22 = vadd.f32 1.0, %v1123_v20  ;;  %v593_v20 = vld [vmem:[%s432_s17] sm:$0xff]  ;;  %s499_s18 = scalar_lea.vmem %s1502_s7, %s1428_s22 }
  0x59   : > { %v1127_v23 = vpop.eup %1126  ;;  %v517_v24 = vadd.f32 1.0, %v1125_v21  ;;  %v1026_v21 = vld [vmem:[%s432_s17 + $0x8] sm:$0xff]  ;;  %s1432_s17 = scalar_lea.vmem [#allocation8], %s1396_s21 }
  0x5a   : > { %v1129_v25 = vpop.eup %1128  ;;  %v518_v26 = vadd.f32 1.0, %v1127_v23  ;;  %1130 = vrcp.f32 %v516_v22  ;;  %v617_v22 = vmul.f32 %v1028_v10, %v605_v16 }
  0x5b   : > { %v519_v27 = vadd.f32 1.0, %v1129_v25  ;;  %1132 = vrcp.f32 %v517_v24  ;;  %v616_v24 = vadd.f32 %v615_v18, %v593_v20 }
  0x5c   : > { %1134 = vrcp.f32 %v518_v26  ;;  %v618_v26 = vadd.f32 %v1026_v21, %v617_v22 }
  0x5d   : > { %1136 = vrcp.f32 %v519_v27 }
  0x64   : > { %v1131_v28 = vpop.eup %1130 }
  0x65   : > { %v1133_v29 = vpop.eup %1132  ;;  %1138 = vrsqrt.f32 %v1131_v28  ;;  %vm560_vm0 = vcmp.gt.f32.partialorder %v1131_v28, 0.05  ;;  %vm530_vm5 = vcmp.eq.f32.partialorder %v1131_v28, inf  ;;  %vm532_vm6 = vcmp.eq.f32.partialorder %v1131_v28, 0.0 }
  0x66   : > { %v1135_v30 = vpop.eup %1134  ;;  %1140 = vrsqrt.f32 %v1133_v29  ;;  %vm561_vm1 = vcmp.gt.f32.partialorder %v1133_v29, 0.05  ;;  %v564_v33 = vsel %vm560_vm0, 1, %v1237_v32  ;;  %vm537_vm4 = vcmp.eq.f32.partialorder %v1133_v29, inf }
  0x67   : > { %v1137_v31 = vpop.eup %1136  ;;  %1142 = vrsqrt.f32 %v1135_v30  ;;  %vm562_vm2 = vcmp.gt.f32.partialorder %v1135_v30, 0.05  ;;  %v565_v34 = vsel %vm561_vm1, 1, %v1237_v32  ;;  %vm539_vm7 = vcmp.eq.f32.partialorder %v1133_v29, 0.0 }
  0x68   : > { %1144 = vrsqrt.f32 %v1137_v31  ;;  %vm563_vm3 = vcmp.gt.f32.partialorder %v1137_v31, 0.05  ;;  %v566_v35 = vsel %vm562_vm2, 1, %v1237_v32  ;;  %v568_v37 = vadd.s32 %v565_v34, %v564_v33 }
  0x69   : > { %v567_v36 = vsel %vm563_vm3, 1, %v1237_v32  ;;  %v533_v42 = vand.u32 2147483648, %v1131_v28  ;;  %v540_v45 = vand.u32 2147483648, %v1133_v29  ;;  %vm544_vm8 = vcmp.eq.f32.partialorder %v1135_v30, inf }
  0x6a   : > { %v569_v38 = vadd.s32 %v567_v36, %v566_v35  ;;  %vm546_vm9 = vcmp.eq.f32.partialorder %v1135_v30, 0.0  ;;  %v547_v49 = vand.u32 2147483648, %v1135_v30  ;;  %vm551_vm10 = vcmp.eq.f32.partialorder %v1137_v31, inf }
  0x6b   : > { %vm553_vm11 = vcmp.eq.f32.partialorder %v1137_v31, 0.0  ;;  %v554_v53 = vand.u32 2147483648, %v1137_v31  ;;  %1146 = vpow2.f32 %v619_v6  ;;  %v640_v35 = vstv %s638_s16 }
  0x6c   : > { %v570_v39 = vadd.s32 %v569_v38, %v568_v37  ;;  %1148 = vpow2.f32 %v624_v7  ;;  %v643_v37 = vstv %s635_s23  ;;  %s690_s23 = sadd.s32 (%p1359_p1), %s1222_s10, %s1040_s20 }
  0x6d   : > { %s1041_s16 = sshll.u32 (%p1359_p1), %s690_s23, 3 }
  0x6e   : > { %v572_v41 = vshrl.u32 %v570_v39, 16  ;;  %v571_v43 = vand.u32 65535, %v570_v39  ;;  %s692_s27 = scalar_lea.vmem (%p1359_p1), %s1499_s4, %s1041_s16 }
  0x6f   : > { %v1139_v40 = vpop.eup %1138 }
  0x70   : > { %v1141_v44 = vpop.eup %1140  ;;  %v529_v46 = vmul.f32 %v1139_v40, %v1131_v28  ;;  %v574_v50 = vcvt.s32.f32 %v572_v41  ;;  %v573_v58 = vcvt.s32.f32 %v571_v43 }
  0x71   : > { %v1143_v47 = vpop.eup %1142  ;;  %v536_v48 = vmul.f32 %v1141_v44, %v1133_v29 }
  0x72   : > { %v1145_v51 = vpop.eup %1144  ;;  %v543_v52 = vmul.f32 %v1143_v47, %v1135_v30  ;;  %v531_v54 = vsel %vm530_vm5, %v1131_v28, %v529_v46  ;;  %577 = vadd.xlane.f32.xlu0 %v574_v50 }
  0x73   : > { %v538_v55 = vsel %vm537_vm4, %v1133_v29, %v536_v48  ;;  %v550_v56 = vmul.f32 %v1145_v51, %v1137_v31  ;;  %v534_v57 = vsel %vm532_vm6, %v533_v42, %v531_v54 }
  0x74   : > { %v541_v59 = vsel %vm539_vm7, %v540_v45, %v538_v55  ;;  %v545_v60 = vsel %vm544_vm8, %v1135_v30, %v543_v52  ;;  %556 = vst [vmem:[%s1409_s8] sm:$0xff] %v534_v57 }
  0x75   : > { %v548_v61 = vsel %vm546_vm9, %v547_v49, %v545_v60  ;;  %v552_v62 = vsel %vm551_vm10, %v1137_v31, %v550_v56  ;;  %557 = vst [vmem:[%s1409_s8 + $0x8] sm:$0xff] %v541_v59  ;;  %v1147_v8 = vpop.eup %1146 }
  0x76   : > { %v555_v63 = vsel %vm553_vm11, %v554_v53, %v552_v62  ;;  %558 = vst [vmem:[%s1409_s8 + $0x10] sm:$0xff] %v548_v61  ;;  %575 = vadd.xlane.f32.xlu0 %v573_v58  ;;  %v1149_v12 = vpop.eup %1148  ;;  %v621_v15 = vmul.f32 %v1147_v8, %v1027_v9 }
  0x77   : > { %559 = vst [vmem:[%s1409_s8 + $0x18] sm:$0xff] %v555_v63  ;;  %v626_v17 = vmul.f32 %v1149_v12, %v1028_v10 }
  0x78   : > { %v1032_v19 = vadd.f32 -1.0, %v621_v15 }
  0x79   : > { %v1033_v23 = vadd.f32 -1.0, %v626_v17 }
  0x7a   : > { %v623_v25 = vmul.f32 0.5, %v1032_v19 }
  0x7b   : > { %v628_v27 = vmul.f32 0.5, %v1033_v23  ;;  %v726_v58 = vld [vmem:[%s1409_s8] sm:$0xff] (%p1359_p1) }
  0x7c   : > { %v629_v28 = vsub.f32 %v616_v24, %v623_v25  ;;  %v631_v29 = vadd.f32 %v623_v25, %v616_v24  ;;  %v728_v59 = vld [vmem:[%s1409_s8 + $0x8] sm:$0xff] (%p1359_p1)  ;;  %727 = vst [vmem:[%s692_s27] sm:$0xff] (%p1359_p1), %v726_v58 }
  0x7d   : > { %v630_v30 = vsub.f32 %v618_v26, %v628_v27  ;;  %v632_v31 = vadd.f32 %v628_v27, %v618_v26  ;;  %v730_v60 = vld [vmem:[%s1409_s8 + $0x10] sm:$0xff] (%p1359_p1)  ;;  %729 = vst [vmem:[%s692_s27 + $0x10] sm:$0xff] (%p1359_p1), %v728_v59 }
  0x7e   : > { %v639_v33 = vmax.f32 %v629_v28, 0.0  ;;  %v645_v34 = vmax.f32 %v631_v29, 0.0  ;;  %v732_v61 = vld [vmem:[%s1409_s8 + $0x18] sm:$0xff] (%p1359_p1)  ;;  %731 = vst [vmem:[%s692_s27 + $0x20] sm:$0xff] (%p1359_p1), %v730_v60 }
  0x7f   : > { %v642_v36 = vmax.f32 %v630_v30, 0.0  ;;  %v647_v38 = vmax.f32 %v632_v31, 0.0  ;;  %733 = vst [vmem:[%s692_s27 + $0x30] sm:$0xff] (%p1359_p1), %v732_v61 }
  0x80   : > { %v641_v39 = vmin.f32 %v640_v35, %v639_v33  ;;  %v646_v40 = vmin.f32 %v640_v35, %v645_v34 }
  0x81   : > { %v644_v41 = vmin.f32 %v643_v37, %v642_v36  ;;  %v648_v42 = vmin.f32 %v643_v37, %v647_v38 }
  0x82   : > { %649 = vst [vmem:[%s1432_s17] sm:$0xff] %v641_v39  ;;  %1036 = vst [vmem:[%s1432_s17 + $0x10] sm:$0xff] %v646_v40  ;;  %v656_v43 = vsub.f32 %v646_v40, %v641_v39 }
  0x83   : > { %1035 = vst [vmem:[%s1432_s17 + $0x8] sm:$0xff] %v644_v41  ;;  %1037 = vst [vmem:[%s1432_s17 + $0x18] sm:$0xff] %v648_v42  ;;  %v658_v44 = vsub.f32 %v648_v42, %v644_v41 }
  0x84   : > { %vm657_vm12 = vcmp.gt.f32.partialorder %v656_v43, 0.0 }
  0x85   : > { %vm659_vm13 = vcmp.gt.f32.partialorder %v658_v44, 0.0 }
  0x86   : > { %vm660_vm14 = vmand %vm657_vm12, %vm659_vm13 }
  0x87   : > { %v661_v45 = vsel %vm660_vm14, 1, %v1237_v32 }
  0x88   : > { %662 = vst [vmem:[%s492_s29] sm:$0xff] %v661_v45 }
  0xff   : > { %v578_v46 = vpop.xlane.xlu0 %577 }
 0x100   : > { %v580_v47 = vcvt.f32.s32 %v578_v46 }
 0x102   : > { %v581_v49 = vshll.u32 %v580_v47, 16 }
 0x103   : > { %v576_v48 = vpop.xlane.xlu0 %575 }
 0x104   : > { %v579_v50 = vcvt.f32.s32 %v576_v48 }
 0x106   : > { %v582_v51 = vadd.s32 %v581_v49, %v579_v50 }
 0x108   : > { %v583_v52 = vrot.slane %v582_v51, 4 }
 0x10a   : > { %v584_v53 = vadd.s32 %v583_v52, %v582_v51 }
 0x10c   : > { %v585_v54 = vrot.slane %v584_v53, 2 }
 0x10e   : > { %v586_v55 = vadd.s32 %v585_v54, %v584_v53 }
 0x110   : > { %v587_v56 = vrot.slane %v586_v55, 1 }
 0x112   : > { %v588_v57 = vadd.s32 %v587_v56, %v586_v55 }
 0x114   : > { %1046 = vpush %v588_v57 }
 0x141   : > { %688 = sbr.rel (!%p1359_p1) target bundleno = 328 (0x148), region = 150 }
 0x145   : > { %s1047_s15 = spop %1046 }
 0x146   : > { %v590_v32 = vstv %s1047_s15 }
 0x147   : > { %592 = vst.msk [vmem:[%s499_s18] sm:$0x1] %vm591_vm15, %v590_v32 }
 0x148 PF: > { %739 = sbr.rel (!%p1359_p1) target bundleno = 335 (0x14f), region = 188  ;;  %s1042_s8 = sshll.u32 (%p1359_p1), %s1218_s9, 3  ;;  %v777_v62 = vld [vmem:[%s1432_s17] sm:$0xff] (%p1359_p1)  ;;  %v779_v63 = vld [vmem:[%s1432_s17 + $0x8] sm:$0xff] (%p1359_p1)  ;;  %v781_v0 = vld [vmem:[%s1432_s17 + $0x10] sm:$0xff] (%p1359_p1) }
 0x149   : > { %s741_s1 = sadd.s32 (%p1359_p1), %s1222_s10, %s1042_s8  ;;  %v783_v1 = vld [vmem:[%s1432_s17 + $0x18] sm:$0xff] (%p1359_p1) }
 0x14a   : > { %s1043_s29 = sshll.u32 (%p1359_p1), %s741_s1, 3 }
 0x14b   : > { %s743_s18 = scalar_lea.vmem (%p1359_p1), %s1500_s5, %s1043_s29 }
 0x14c   : > { %778 = vst [vmem:[%s743_s18] sm:$0xff] (%p1359_p1), %v777_v62  ;;  %780 = vst [vmem:[%s743_s18 + $0x10] sm:$0xff] (%p1359_p1), %v779_v63 }
 0x14d   : > { %782 = vst [vmem:[%s743_s18 + $0x20] sm:$0xff] (%p1359_p1), %v781_v0  ;;  %784 = vst [vmem:[%s743_s18 + $0x30] sm:$0xff] (%p1359_p1), %v783_v1 }
 0x14f PF: > { %s24_s13 = sadd.s32 1, %s1234_s13   ;;  %s1510_s24 = sld [smem:[#allocation10_spill]] }
 0x150   : > { %p21_p8 = scmp.ge.s32.totalorder %s24_s13, 6   ;;  %s1511_s29 = smov %s1206_s30 }
 0x151   : > { %s1512_s30 = smov %s1364_s25  ;;  %s1513_s8 = smov %s1214_s0 }
 0x152   : > { %s1514_s0 = smov %s1367_s26  ;;  %s1515_s9 = smov %s1226_s11 }
 0x153   : > { %s1516_s10 = smov %s1230_s12  ;;  %s1517_s11 = smov %s1520_s14 }
 0x154   :  { %23 = sbr.rel (!%p21_p8) target bundleno = 20 (0x14), region = 318 }
 0x155   : > { %s1518_s12 = smov %s1510_s24 }

</bundles_post_ra>
